<compile_context>
chip_gen: v6e
topology: v6e:2x2x1
jax: 0.10.0
libtpu: 0.0.40
codegen_flags: <defaults>
</compile_context>

<pallas_src>
from collections import namedtuple
from functools import partial

import jax
import jax.numpy as jnp
from jax.experimental import pallas as pl
from jax.experimental.pallas import tpu as pltpu

LANES = 128          # TPU lane width (last dim of a vreg)
SUBLANES = 8         # TPU sublane count
MAX_BATCH_TILE = 512 # batch rows per grid step for large-batch calls

Meta = namedtuple(
    "Meta",
    ["D_item_in", "D_context_in", "D_in", "R_in", "D_out",
     "off_w1", "off_w2", "off_w3", "off_b", "slab_rows", "compute_dtype"],
)


def _round_up(x, m):
    return (x + m - 1) // m * m


# --------------------------------------------------------------------------
# One-time parameter packing (fusion + transpose + lane padding + bf16 cast).
# --------------------------------------------------------------------------
def pack_params(params, compute_dtype=jnp.bfloat16):
    """Fuse the 5 Linear layers into 3 matmuls and pack everything into one
    lane-padded (rows, 128) slab. Returns (slab, meta)."""
    w_ih, b_ih = params["w_ih"], params["b_ih"]   # (D_h_item, D_item_in)
    w_ch, b_ch = params["w_ch"], params["b_ch"]   # (D_h_context, D_context_in)
    w_hc, b_hc = params["w_hc"], params["b_hc"]   # (D_h_combined, D_h_item)
    w_cc, b_cc = params["w_cc"], params["b_cc"]   # (D_h_combined, D_h_context)
    w_co, b_co = params["w_co"], params["b_co"]   # (D_out, D_h_combined)

    D_h_item, D_item_in = w_ih.shape
    D_h_context, D_context_in = w_ch.shape
    D_h_combined = w_hc.shape[0]
    D_out = w_co.shape[0]

    D_in = D_item_in + D_context_in
    D_h = D_h_item + D_h_context
    assert D_h <= LANES and D_h_combined <= LANES and D_out <= LANES, (
        "single-slab packed layout assumes all feature dims <= 128")

    R_in = _round_up(D_in, SUBLANES)

    # Layer 1: block-diagonal weight, concatenated bias. (R_in, 128), zero padded.
    w1 = jnp.zeros((R_in, LANES), jnp.float32)
    w1 = w1.at[:D_item_in, :D_h_item].set(w_ih.T)
    w1 = w1.at[D_item_in:D_in, D_h_item:D_h].set(w_ch.T)
    b1 = (jnp.zeros((LANES,), jnp.float32)
          .at[:D_h_item].set(b_ih)
          .at[D_h_item:D_h].set(b_ch))

    # Layer 2: stacked [W_hc.T ; W_cc.T], biases pre-summed. (128, 128), zero padded.
    w2 = jnp.zeros((LANES, LANES), jnp.float32)
    w2 = w2.at[:D_h_item, :D_h_combined].set(w_hc.T)
    w2 = w2.at[D_h_item:D_h, :D_h_combined].set(w_cc.T)
    b2 = jnp.zeros((LANES,), jnp.float32).at[:D_h_combined].set(b_hc + b_cc)

    # Layer 3 (output). (128, 128), zero padded.
    w3 = jnp.zeros((LANES, LANES), jnp.float32)
    w3 = w3.at[:D_h_combined, :D_out].set(w_co.T)
    b3 = jnp.zeros((LANES,), jnp.float32).at[:D_out].set(b_co)

    # Each bias sits in its own 8-row block so every kernel slice starts at a
    # sublane-aligned (multiple-of-8) row offset.
    bias_blocks = jnp.zeros((3 * SUBLANES, LANES), jnp.float32)
    bias_blocks = bias_blocks.at[0].set(b1)
    bias_blocks = bias_blocks.at[SUBLANES].set(b2)
    bias_blocks = bias_blocks.at[2 * SUBLANES].set(b3)

    slab = jnp.concatenate([w1, w2, w3, bias_blocks], axis=0).astype(compute_dtype)

    off_w1 = 0
    off_w2 = R_in
    off_w3 = R_in + LANES
    off_b = R_in + 2 * LANES
    meta = Meta(D_item_in=D_item_in, D_context_in=D_context_in,
                D_in=D_in, R_in=R_in, D_out=D_out,
                off_w1=off_w1, off_w2=off_w2, off_w3=off_w3, off_b=off_b,
                slab_rows=int(slab.shape[0]), compute_dtype=compute_dtype)
    return slab, meta


# --------------------------------------------------------------------------
# Kernel: 3 MXU matmuls + 3 bias adds + sigmoid, all lane-dense (128 wide).
# --------------------------------------------------------------------------
def _make_kernel(meta):
    R_in, off_w2, off_w3, off_b = meta.R_in, meta.off_w2, meta.off_w3, meta.off_b
    cdt = meta.compute_dtype

    def kernel(x_ref, slab_ref, out_ref):
        # Static, sublane-aligned views into the packed parameter slab.
        w1 = slab_ref[0:R_in, :]                                  # (R_in, 128)
        w2 = slab_ref[off_w2:off_w2 + LANES, :]                   # (128, 128)
        w3 = slab_ref[off_w3:off_w3 + LANES, :]                   # (128, 128)
        b1 = slab_ref[off_b:off_b + 1, :].astype(jnp.float32)                 # (1, 128)
        b2 = slab_ref[off_b + SUBLANES:off_b + SUBLANES + 1, :].astype(jnp.float32)
        b3 = slab_ref[off_b + 2 * SUBLANES:off_b + 2 * SUBLANES + 1, :].astype(jnp.float32)

        # Fused hidden layer: [h_item | h_context]  (padding lanes stay zero).
        h = jnp.dot(x_ref[...], w1, preferred_element_type=jnp.float32) + b1
        # Fused combined layer.
        c = jnp.dot(h.astype(cdt), w2, preferred_element_type=jnp.float32) + b2
        # Output layer + sigmoid.
        logits = jnp.dot(c.astype(cdt), w3, preferred_element_type=jnp.float32) + b3
        out_ref[...] = jax.nn.sigmoid(logits).astype(out_ref.dtype)

    return kernel


# --------------------------------------------------------------------------
# Forward wrapper (jitted; meta is static). Only per-call work: concat + pad x.
# --------------------------------------------------------------------------
@partial(jax.jit, static_argnames=("meta",))
def rm_net_forward(x_item, x_context, slab, meta):
    B = x_item.shape[0]
    cdt = meta.compute_dtype

    # Concatenate the two inputs and zero-pad the feature axis to R_in.
    x = jnp.concatenate([x_item, x_context], axis=1).astype(cdt)
    if meta.R_in != meta.D_in:
        x = jnp.pad(x, ((0, 0), (0, meta.R_in - meta.D_in)))

    # Batch tiling: one tile for small B, 512-row tiles for large B.
    if B <= MAX_BATCH_TILE:
        TB, Bp = B, B
    else:
        TB = MAX_BATCH_TILE
        Bp = _round_up(B, TB)
    if Bp != B:
        x = jnp.pad(x, ((0, Bp - B), (0, 0)))

    kernel = _make_kernel(meta)

    out_padded = pl.pallas_call(
        kernel,
        out_shape=jax.ShapeDtypeStruct((Bp, LANES), jnp.float32),
        grid=(Bp // TB,),
        in_specs=[
            pl.BlockSpec((TB, meta.R_in), lambda i: (i, 0)),          # activations
            pl.BlockSpec((meta.slab_rows, LANES), lambda i: (0, 0)),  # VMEM-resident params
        ],
        out_specs=pl.BlockSpec((TB, LANES), lambda i: (i, 0)),
        compiler_params=pltpu.CompilerParams(
            dimension_semantics=("parallel",)),
    )(x, slab)

    # Strip lane / batch padding.
    return out_padded[:B, :meta.D_out]


# --------------------------------------------------------------------------
# Parameter init (PyTorch nn.Linear convention) and pure-JAX reference.
# --------------------------------------------------------------------------
def init_params(key, D_item_in, D_context_in, D_out, D_h_item, D_h_context,
                D_h_combined):
    ks = jax.random.split(key, 10)

    def linear(kw, kb, d_in, d_out):
        bound = 1.0 / jnp.sqrt(d_in)
        w = jax.random.uniform(kw, (d_out, d_in), jnp.float32, -bound, bound)
        b = jax.random.uniform(kb, (d_out,), jnp.float32, -bound, bound)
        return w, b

    w_ih, b_ih = linear(ks[0], ks[1], D_item_in, D_h_item)
    w_ch, b_ch = linear(ks[2], ks[3], D_context_in, D_h_context)
    w_hc, b_hc = linear(ks[4], ks[5], D_h_item, D_h_combined)
    w_cc, b_cc = linear(ks[6], ks[7], D_h_context, D_h_combined)
    w_co, b_co = linear(ks[8], ks[9], D_h_combined, D_out)
    return dict(w_ih=w_ih, b_ih=b_ih, w_ch=w_ch, b_ch=b_ch,
                w_hc=w_hc, b_hc=b_hc, w_cc=w_cc, b_cc=b_cc,
                w_co=w_co, b_co=b_co)


def rm_net_ref(x_item, x_context, p):
    """Pure-JAX f32 reference mirroring the PyTorch forward."""
    h_item = x_item @ p["w_ih"].T + p["b_ih"]
    h_ctx = x_context @ p["w_ch"].T + p["b_ch"]
    combined = (h_item @ p["w_hc"].T + p["b_hc"]
                + h_ctx @ p["w_cc"].T + p["b_cc"])
    return jax.nn.sigmoid(combined @ p["w_co"].T + p["b_co"])


if __name__ == "__main__":
    # Small shapes consistent with the module's constructor.
    B = 2
    D_item_in, D_context_in = 8, 4
    D_h_item, D_h_context, D_h_combined = 16, 16, 32
    D_out = 32

    key = jax.random.PRNGKey(0)
    k_item, k_ctx, k_params = jax.random.split(key, 3)

    x_item = jax.random.normal(k_item, (B, D_item_in), jnp.float32)
    x_context = jax.random.normal(k_ctx, (B, D_context_in), jnp.float32)
    params = init_params(k_params, D_item_in, D_context_in, D_out,
                         D_h_item, D_h_context, D_h_combined)

    # One-time packing (fusion + transpose + padding + bf16 cast).
    slab, meta = pack_params(params, compute_dtype=jnp.bfloat16)

    out = rm_net_forward(x_item, x_context, slab, meta)
    out = jax.block_until_ready(out)

    ref = rm_net_ref(x_item, x_context, params)
    assert out.shape == (B, D_out)
    # bf16 MXU operands with f32 accumulation: loose-but-meaningful tolerance.
    assert jnp.allclose(out, ref, atol=2e-2, rtol=0.0), "mismatch vs reference"

    print("KERNEL_OK")
</pallas_src>

<mosaic_0001>
module attributes {stable_mosaic.version = 11 : i64} {
  func.func @kernel(%arg0: i32, %arg1: memref<2x16xbf16, #tpu.memory_space<vmem>>, %arg2: memref<296x128xbf16, #tpu.memory_space<vmem>>, %arg3: memref<2x128xf32, #tpu.memory_space<vmem>>) attributes {dimension_semantics = [#tpu.dimension_semantics<parallel>], iteration_bounds = array<i64: 1>, scalar_prefetch = 0 : i64, scratch_operands = 0 : i64, tpu.core_type = #tpu.core_type<tc>, window_params = [{transform_indices = @transform_0, window_bounds = array<i64: 2, 16>}, {pipeline_mode = #tpu.pipeline_mode<synchronous>, transform_indices = @transform_1, window_bounds = array<i64: 296, 128>}, {transform_indices = @transform_2, window_bounds = array<i64: 2, 128>}]} {
    %c0 = arith.constant 0 : index
    %c0_0 = arith.constant 0 : index
    %0 = vector.load %arg2[%c0, %c0_0] : memref<296x128xbf16, #tpu.memory_space<vmem>>, vector<16x128xbf16>
    %c16 = arith.constant 16 : index
    %c0_1 = arith.constant 0 : index
    %1 = vector.load %arg2[%c16, %c0_1] : memref<296x128xbf16, #tpu.memory_space<vmem>>, vector<128x128xbf16>
    %c144 = arith.constant 144 : index
    %c0_2 = arith.constant 0 : index
    %2 = vector.load %arg2[%c144, %c0_2] : memref<296x128xbf16, #tpu.memory_space<vmem>>, vector<128x128xbf16>
    %c272 = arith.constant 272 : index
    %c0_3 = arith.constant 0 : index
    %3 = vector.load %arg2[%c272, %c0_3] : memref<296x128xbf16, #tpu.memory_space<vmem>>, vector<1x128xbf16>
    %4 = arith.extf %3 : vector<1x128xbf16> to vector<1x128xf32>
    %c280 = arith.constant 280 : index
    %c0_4 = arith.constant 0 : index
    %5 = vector.load %arg2[%c280, %c0_4] : memref<296x128xbf16, #tpu.memory_space<vmem>>, vector<1x128xbf16>
    %6 = arith.extf %5 : vector<1x128xbf16> to vector<1x128xf32>
    %c288 = arith.constant 288 : index
    %c0_5 = arith.constant 0 : index
    %7 = vector.load %arg2[%c288, %c0_5] : memref<296x128xbf16, #tpu.memory_space<vmem>>, vector<1x128xbf16>
    %8 = arith.extf %7 : vector<1x128xbf16> to vector<1x128xf32>
    %c0_6 = arith.constant 0 : index
    %c0_7 = arith.constant 0 : index
    %9 = vector.load %arg1[%c0_6, %c0_7] : memref<2x16xbf16, #tpu.memory_space<vmem>>, vector<2x16xbf16>
    %cst = arith.constant dense<0.000000e+00> : vector<2x128xf32>
    %10 = tpu.matmul %9, %0, %cst {dimension_numbers = #tpu.dot_dimension_numbers<[1], [0], [0], [1], [0, 0, 1, 1], [], []>} : vector<2x16xbf16>, vector<16x128xbf16>, vector<2x128xf32> -> vector<2x128xf32>
    %11 = vector.broadcast %4 : vector<1x128xf32> to vector<2x128xf32>
    %12 = arith.addf %10, %11 : vector<2x128xf32>
    %13 = arith.truncf %12 : vector<2x128xf32> to vector<2x128xbf16>
    %cst_8 = arith.constant dense<0.000000e+00> : vector<2x128xf32>
    %14 = tpu.matmul %13, %1, %cst_8 {dimension_numbers = #tpu.dot_dimension_numbers<[1], [0], [0], [1], [0, 0, 1, 1], [], []>} : vector<2x128xbf16>, vector<128x128xbf16>, vector<2x128xf32> -> vector<2x128xf32>
    %15 = vector.broadcast %6 : vector<1x128xf32> to vector<2x128xf32>
    %16 = arith.addf %14, %15 : vector<2x128xf32>
    %17 = arith.truncf %16 : vector<2x128xf32> to vector<2x128xbf16>
    %cst_9 = arith.constant dense<0.000000e+00> : vector<2x128xf32>
    %18 = tpu.matmul %17, %2, %cst_9 {dimension_numbers = #tpu.dot_dimension_numbers<[1], [0], [0], [1], [0, 0, 1, 1], [], []>} : vector<2x128xbf16>, vector<128x128xbf16>, vector<2x128xf32> -> vector<2x128xf32>
    %19 = vector.broadcast %8 : vector<1x128xf32> to vector<2x128xf32>
    %20 = arith.addf %18, %19 : vector<2x128xf32>
    %21 = arith.negf %20 : vector<2x128xf32>
    %22 = math.exp %21 : vector<2x128xf32>
    %cst_10 = arith.constant 1.000000e+00 : f32
    %23 = vector.broadcast %cst_10 : f32 to vector<2x128xf32>
    %24 = arith.addf %23, %22 : vector<2x128xf32>
    %25 = arith.divf %23, %24 : vector<2x128xf32>
    %c0_11 = arith.constant 0 : index
    %c0_12 = arith.constant 0 : index
    %26 = vector.load %arg3[%c0_11, %c0_12] : memref<2x128xf32, #tpu.memory_space<vmem>>, vector<2x128xf32>
    tpu.vector_store %arg3[%c0_11, %c0_12], %25 {strides = array<i32>} : memref<2x128xf32, #tpu.memory_space<vmem>>, vector<2x128xf32>,
    return
  }
  func.func @transform_0(%arg0: i32) -> (i32, i32) {
    %c0_i32 = arith.constant 0 : i32
    %c0_i32_0 = arith.constant 0 : i32
    return %arg0, %c0_i32 : i32, i32
  }
  func.func @transform_1(%arg0: i32) -> (i32, i32) {
    %c0_i32 = arith.constant 0 : i32
    %c0_i32_0 = arith.constant 0 : i32
    %c0_i32_1 = arith.constant 0 : i32
    return %c0_i32, %c0_i32_0 : i32, i32
  }
  func.func @transform_2(%arg0: i32) -> (i32, i32) {
    %c0_i32 = arith.constant 0 : i32
    %c0_i32_0 = arith.constant 0 : i32
    return %arg0, %c0_i32 : i32, i32
  }
}

</mosaic_0001>

<bundles_post_ra>
// kernel: rm_net_forward.1
= control target key start
LH: loop header
LB: loop body
LE: loop exit
PB: predicated region body
PF: predicated region fallthrough
CT: control target
= control target key end

     0   :  { %7 = vsyncpa [#allocation3], 0  ;;  %s516_s0 = inlined_call_operand.vmem [shape: bf16[2,16], index: 0, kind: input, shape index: {}]   ;;  %s517_s1 = inlined_call_operand.hbm [shape: bf16[296,128], index: 1, kind: input, shape index: {}]   ;;  %s518_s2 = inlined_call_operand.hbm [shape: f32[2,128], index: 2, kind: output, shape index: {}]  }
   0x1   :  { %8 = vsyncpa [#allocation4], 0  ;;  %s486_s9 = smov [#allocation2]  }
   0x2   :  { %s16_s10 = sshll.u32 %s486_s9, 4  ;;  %s17_s10 = int_to_ptr.vmem [resolvable:$true] %s16_s10 }
   0x3   :  { %s450_s11 = scalar_lea.vmem %s17_s10, 2368  ;;  %p455_p1 = scmp.lt.s32.totalorder %s17_s10, %s17_s10 }
   0x4   :  { %p451_p0 = scmp.ne.s32.totalorder %s17_s10, %s450_s11  ;;  %p456_p2 = scmp.lt.s32.totalorder %s450_s11, %s450_s11 }
   0x6   :  { %p457_p3 = por %p456_p2, %p455_p1 }
   0x8   :  { %p458_p4 = pnand %p457_p3, %p451_p0 }
   0xa   :  { %461 = shalt.err (!%p458_p4)
}
   0xb   :  { %s487_s12 = smov 64   ;;  %s488_s13 = smov 4  }
   0xc   :  { %22 = dma.hbm_to_vmem [thread:$0]  %s517_s1, 2368, %s17_s10, [#allocation3], %s487_s12, %s487_s12, %s488_s13  }
   0xd   :  { %482 = dma.done.wait [#allocation3], 2368  }
   0xe   :  { %483 = vsyncadd [#allocation3], 4294964928  ;;  %v489_v0 = vmov 0.0   ;;  %vm490_vm0 = vmmov 0   ;;  %v421_v1 = vld [vmem:[#allocation2] sm:$0xff]   ;;  %vm78_vm1 = vcmask 130048   ;;  %v68_v18 = vlaneseq }
   0xf   :  { %369 = vmatprep.subr.bf16.mxu0 %v489_v0  ;;  %371 = vmatprep.mubr.msk.bf16.mxu0 %vm490_vm0, %v489_v0  ;;  %v67_v2 = vld [vmem:[%s516_s0] sm:$0x1]  ;;  %v423_v4 = vld [vmem:[#allocation2 + $0x38] sm:$0xff]   ;;  %v424_v5 = vld [vmem:[#allocation2 + $0x30] sm:$0xff]   ;;  %s491_s0 = smov [#allocation5]  }
  0x10   :  { %375 = vmatprep.subr.bf16.mxu1 %v489_v0  ;;  %391 = vmatprep.mubr.msk.bf16.mxu1 %vm490_vm0, %v489_v0  ;;  %v422_v3 = vld [vmem:[#allocation2 + $0x40] sm:$0xff]   ;;  %v425_v6 = vld [vmem:[#allocation2 + $0x28] sm:$0xff]   ;;  %v427_v8 = vld [vmem:[#allocation2 + $0x18] sm:$0xff]   ;;  %v69_v19 = vshrl.u32 %v68_v18, 7  ;;  %s321_s1 = sshll.u32 %s491_s0, 4  ;;  %s322_s1 = int_to_ptr.vmem [resolvable:$true] %s321_s1 }
  0x11   :  { %370 = vmatpush3.bf16.msra.mxu0 %v421_v1  ;;  %376 = vmatpush3.bf16.msra.mxu1 %v422_v3  ;;  %v426_v7 = vld [vmem:[#allocation2 + $0x20] sm:$0xff]   ;;  %v428_v9 = vld [vmem:[#allocation2 + $0x10] sm:$0xff]   ;;  %v429_v10 = vld [vmem:[#allocation2 + $0x8] sm:$0xff]   ;;  %s462_s18 = scalar_lea.vmem %s322_s1, 32  ;;  %p467_p6 = scmp.lt.s32.totalorder %s322_s1, %s322_s1 }
  0x12   :  { %395 = vmatprep.subr.bf16.mxu0 %v489_v0  ;;  %377 = vmatprep.subr.bf16.mxu1 %v489_v0  ;;  %v430_v11 = vld [vmem:[#allocation2 + $0x80] sm:$0xff]   ;;  %v431_v12 = vld [vmem:[#allocation2 + $0x78] sm:$0xff]   ;;  %v432_v13 = vld [vmem:[#allocation2 + $0x70] sm:$0xff]   ;;  %v70_v22 = vsub.s32 0, %v69_v19  ;;  %p463_p5 = scmp.ne.s32.totalorder %s322_s1, %s462_s18  ;;  %p468_p7 = scmp.lt.s32.totalorder %s462_s18, %s462_s18 }
  0x13   :  { %v433_v14 = vld [vmem:[#allocation2 + $0x68] sm:$0xff]   ;;  %v434_v15 = vld [vmem:[#allocation2 + $0x60] sm:$0xff]   ;;  %v435_v16 = vld [vmem:[#allocation2 + $0x58] sm:$0xff]  }
  0x14   :  { %372 = vmatmul.mubr.msk.bf16.vlgmr.msra.gmra.mxu0 %vm78_vm1, %v67_v2  ;;  %v436_v17 = vld [vmem:[#allocation2 + $0x50] sm:$0xff]   ;;  %v61_v20 = vld [vmem:[#allocation2 + $0x88] sm:$0x1]  ;;  %v63_v31 = vld [vmem:[#allocation2 + $0x8c] sm:$0x1]  ;;  %p469_p8 = por %p468_p7, %p467_p6 }
  0x15   :  { %411 = vmatprep.mubr.msk.bf16.mxu0 %vm490_vm0, %v489_v0  ;;  %378 = vmatpush3.bf16.msra.mxu1 %v423_v4  ;;  %v62_v21 = vunpack.c.l.bf16 %v61_v20  ;;  %v437_v30 = vld [vmem:[#allocation2 + $0x48] sm:$0xff]   ;;  %v64_v32 = vunpack.c.l.bf16 %v63_v31  ;;  %v65_v40 = vld [vmem:[#allocation2 + $0x90] sm:$0x1] }
  0x16   :  { %379 = vmatprep.subr.bf16.mxu1 %v489_v0  ;;  %396 = vmatpush3.bf16.msra.mxu0 %v430_v11  ;;  %v66_v41 = vunpack.c.l.bf16 %v65_v40  ;;  %p470_p9 = pnand %p469_p8, %p463_p5 }
  0x17   :  { %397 = vmatprep.subr.bf16.mxu0 %v489_v0  ;;  %v71_v23 = vrot.slane %v62_v21, %v70_v22  ;;  %v126_v33 = vrot.slane %v64_v32, %v70_v22 }
  0x18   :  { %v219_v42 = vrot.slane %v66_v41, %v70_v22 }
  0x19   :  { %380 = vmatpush3.bf16.msra.mxu1 %v424_v5 }
  0x1a   :  { %381 = vmatprep.subr.bf16.mxu1 %v489_v0  ;;  %398 = vmatpush3.bf16.msra.mxu0 %v431_v12 }
  0x1b   :  { %399 = vmatprep.subr.bf16.mxu0 %v489_v0 }
  0x1d   :  { %382 = vmatpush3.bf16.msra.mxu1 %v425_v6 }
  0x1e   :  { %383 = vmatprep.subr.bf16.mxu1 %v489_v0  ;;  %400 = vmatpush3.bf16.msra.mxu0 %v432_v13 }
  0x1f   :  { %401 = vmatprep.subr.bf16.mxu0 %v489_v0 }
  0x21   :  { %384 = vmatpush3.bf16.msra.mxu1 %v426_v7 }
  0x22   :  { %385 = vmatprep.subr.bf16.mxu1 %v489_v0  ;;  %402 = vmatpush3.bf16.msra.mxu0 %v433_v14 }
  0x23   :  { %403 = vmatprep.subr.bf16.mxu0 %v489_v0 }
  0x25   :  { %386 = vmatpush3.bf16.msra.mxu1 %v427_v8 }
  0x26   :  { %387 = vmatprep.subr.bf16.mxu1 %v489_v0  ;;  %404 = vmatpush3.bf16.msra.mxu0 %v434_v15 }
  0x27   :  { %405 = vmatprep.subr.bf16.mxu0 %v489_v0 }
  0x29   :  { %388 = vmatpush3.bf16.msra.mxu1 %v428_v9 }
  0x2a   :  { %389 = vmatprep.subr.bf16.mxu1 %v489_v0  ;;  %406 = vmatpush3.bf16.msra.mxu0 %v435_v16 }
  0x2b   :  { %407 = vmatprep.subr.bf16.mxu0 %v489_v0 }
  0x2d   :  { %390 = vmatpush3.bf16.msra.mxu1 %v429_v10 }
  0x2e   :  { %408 = vmatpush3.bf16.msra.mxu0 %v436_v17 }
  0x2f   :  { %409 = vmatprep.subr.bf16.mxu0 %v489_v0 }
  0x32   :  { %410 = vmatpush3.bf16.msra.mxu0 %v437_v30 }
  0xd4   :  { %v116_v24 = vpop.f32.mrf.mxu0 }
  0xd5   :  { %v117_v25 = vadd.f32 %v116_v24, %v71_v23 }
  0xd6   :  { %v373_v26 = vpop.f32.mrf.mxu0 }
  0xd7   :  { %v122_v27 = vpack.c.bf16 %v117_v25, %v117_v25 }
  0xd8   :  { %v119_v28 = vpop.f32.mrf.mxu0 }
  0xd9   :  { %392 = vmatmul.mubr.bf16.vlgmr.msra.gmra.mxu1 %v122_v27 }
  0xda   :  { %v374_v29 = vpop.f32.mrf.mxu0 }
 0x199   :  { %v209_v34 = vpop.f32.mrf.mxu1 }
 0x19a   :  { %v210_v35 = vadd.f32 %v209_v34, %v126_v33 }
 0x19b   :  { %v393_v36 = vpop.f32.mrf.mxu1 }
 0x19c   :  { %v215_v37 = vpack.c.bf16 %v210_v35, %v210_v35 }
 0x19d   :  { %v212_v38 = vpop.f32.mrf.mxu1 }
 0x19e   :  { %412 = vmatmul.mubr.bf16.vlgmr.msra.gmra.mxu0 %v215_v37 }
 0x19f   :  { %v394_v39 = vpop.f32.mrf.mxu1 }
 0x25e   :  { %v302_v43 = vpop.f32.mrf.mxu0 }
 0x25f   :  { %v303_v44 = vadd.f32 %v302_v43, %v219_v42 }
 0x260   :  { %v413_v45 = vpop.f32.mrf.mxu0 }
 0x261   :  { %v348_v46 = vmul.f32 -1.442695, %v303_v44 }
 0x262   :  { %v305_v47 = vpop.f32.mrf.mxu0 }
 0x263   :  { %438 = vpow2.f32 %v348_v46 }
 0x264   :  { %v414_v48 = vpop.f32.mrf.mxu0 }
 0x270   :  { %v439_v49 = vpop.eup %438 }
 0x271   :  { %v311_v50 = vadd.f32 1.0, %v439_v49 }
 0x273   :  { %440 = vrcp.f32 %v311_v50 }
 0x280   :  { %v441_v51 = vpop.eup %440 }
 0x281   :  { %314 = vst [vmem:[#allocation5] sm:$0x3] %v441_v51 }
 0x282   :  { %473 = shalt.err (!%p470_p9)
}
 0x283   :  { %324 = dma.vmem_to_hbm [thread:$0]  %s322_s1, 32, %s518_s2, [#allocation4]  }
 0x284   :  { %484 = dma.done.wait [#allocation4], 32  }
 0x285   :  { %485 = vsyncadd [#allocation4], 4294967264 }
 0x286   :  { %328 = vsyncpa [#allocation3], 1 }
 0x287   :  { %329 = vsyncpa [#allocation4], 1 }

</bundles_post_ra>
